<compile_context>
chip_gen: v5e
topology: v5e:2x2
jax: 0.10.0
libtpu: 0.0.40
codegen_flags: <defaults>
</compile_context>

<pallas_src>
import jax
import jax.numpy as jnp
from jax.experimental import pallas as pl
from jax.experimental.pallas import tpu as pltpu


def highway_kernel(x_ref, w_ref, b_ref, o_ref):
    x = x_ref[...]                                   # (tm, D), native dtype
    d = x.shape[-1]
    # Single fused MXU pass: (tm, D) @ (D, 2D) -> f32 (tm, 2D)
    gt = jnp.dot(x, w_ref[...], preferred_element_type=jnp.float32)
    gt = gt + b_ref[...].astype(jnp.float32)         # (1, 2D) broadcast over rows
    g = jnp.maximum(gt[:, :d], 0.0)                  # fc1 -> relu
    t = jax.nn.sigmoid(gt[:, d:])                    # fc2 -> sigmoid (EUP)
    x_res = x.astype(jnp.float32)                    # upcast only the residual term
    o_ref[...] = (g * t + (1.0 - t) * x_res).astype(o_ref.dtype)


def _round_up(n, m):
    return ((n + m - 1) // m) * m


def highway_forward(x, w1, b1, w2, b2, *, tm=256, param_dtype=None):
    """Highway forward.

    x       : (B, D)
    w1, w2  : (D, D)  PyTorch nn.Linear layout (out_features, in_features)
    b1, b2  : (D,)
    tm      : row tile (clamped to the padded batch); multiples of 128 preferred.
    param_dtype : dtype the weights/biases are fed to the MXU in (e.g. bf16 on
                  v6e/v7x). Defaults to x.dtype. Accumulation is always f32.
    """
    B, D = x.shape
    assert w1.shape == (D, D) and w2.shape == (D, D), \
        "highway residual requires output_size == input_size"
    if param_dtype is None:
        param_dtype = x.dtype

    # Fused weight: columns [0:D) -> fc1 (g path), [D:2D) -> fc2 (t path).
    w_fused = jnp.concatenate([w1.T, w2.T], axis=1).astype(param_dtype)   # (D, 2D)
    b_fused = jnp.concatenate([b1, b2]).reshape(1, 2 * D).astype(param_dtype)

    # Row tiling: large tiles for MXU occupancy, padded batch instead of assert.
    tm_eff = min(_round_up(tm, 8), _round_up(B, 8))
    B_pad = _round_up(B, tm_eff)
    x_pad = x if B_pad == B else jnp.pad(x, ((0, B_pad - B), (0, 0)))
    grid = (B_pad // tm_eff,)

    itemsize_x = jnp.dtype(x.dtype).itemsize
    itemsize_w = jnp.dtype(param_dtype).itemsize
    cost = pl.CostEstimate(
        flops=4 * B_pad * D * D + 6 * B_pad * D,
        transcendentals=B_pad * D,                       # sigmoid exp
        bytes_accessed=(2 * B_pad * D * itemsize_x       # x in + out
                        + 2 * D * D * itemsize_w         # fused weight
                        + 2 * D * itemsize_w),           # fused bias
    )

    def build(single_buffer_params):
        # Grid-invariant weights/biases: one resident copy is enough.
        extra = {"pipeline_mode": pl.Buffered(1)} if single_buffer_params else {}
        grid_spec = pltpu.PrefetchScalarGridSpec(
            num_scalar_prefetch=0,
            grid=grid,
            in_specs=[
                pl.BlockSpec((tm_eff, D), lambda i: (i, 0)),           # x row tile
                pl.BlockSpec((D, 2 * D), lambda i: (0, 0), **extra),   # fused W
                pl.BlockSpec((1, 2 * D), lambda i: (0, 0), **extra),   # fused b
            ],
            out_specs=pl.BlockSpec((tm_eff, D), lambda i: (i, 0)),
        )
        return pl.pallas_call(
            highway_kernel,
            out_shape=jax.ShapeDtypeStruct((B_pad, D), x.dtype),
            grid_spec=grid_spec,
            compiler_params=pltpu.CompilerParams(
                dimension_semantics=("parallel",),
                # Fits v7x's 64 MiB physical VMEM; raises the 16/32 MiB defaults.
                vmem_limit_bytes=64 * 1024 * 1024,
            ),
            cost_estimate=cost,
        )(x_pad, w_fused, b_fused)

    try:
        out = jax.block_until_ready(build(True))
    except Exception:
        # pipeline_mode=pl.Buffered(1) not supported by this jax build / lowering
        # path -> fall back to default double-buffering (correctness unchanged).
        out = jax.block_until_ready(build(False))

    return out[:B] if B_pad != B else out


def init_linear_params(key, in_features, out_features):
    """Deterministic PyTorch-style nn.Linear init: U(-1/sqrt(in), 1/sqrt(in))."""
    kw, kb = jax.random.split(key)
    bound = 1.0 / jnp.sqrt(jnp.float32(in_features))
    w = jax.random.uniform(kw, (out_features, in_features), jnp.float32, -bound, bound)
    b = jax.random.uniform(kb, (out_features,), jnp.float32, -bound, bound)
    return w, b


def reference_highway(x, w1, b1, w2, b2):
    g = jax.nn.relu(x @ w1.T + b1)
    t = jax.nn.sigmoid(x @ w2.T + b2)
    return g * t + (1.0 - t) * x


if __name__ == "__main__":
    # input_size == output_size is required by the module's residual term.
    B, D = 16, 128

    key = jax.random.PRNGKey(0)
    kx, k1, k2 = jax.random.split(key, 3)

    x = jax.random.normal(kx, (B, D), jnp.float32)
    w1, b1 = init_linear_params(k1, D, D)   # fc1: (out, in), (out,)
    w2, b2 = init_linear_params(k2, D, D)   # fc2

    ref = reference_highway(x, w1, b1, w2, b2)

    # f32 path: must match the reference tightly.
    out = jax.block_until_ready(highway_forward(x, w1, b1, w2, b2))
    assert out.shape == (B, D)
    assert jnp.allclose(out, ref, atol=1e-5, rtol=1e-5), "f32 mismatch vs reference"

    # bf16 MXU path (v6e/v7x feedback): bf16 activations/weights into the MXU,
    # f32 accumulate + epilogue.  Looser tolerance vs the f32 reference.
    x_bf16 = x.astype(jnp.bfloat16)
    out_bf16 = jax.block_until_ready(
        highway_forward(x_bf16, w1, b1, w2, b2, param_dtype=jnp.bfloat16))
    assert out_bf16.shape == (B, D)
    assert jnp.allclose(out_bf16.astype(jnp.float32), ref, atol=1e-1, rtol=1e-1), \
        "bf16 mismatch vs reference"

    print("KERNEL_OK")
</pallas_src>

<mosaic_0001>
module attributes {stable_mosaic.version = 11 : i64} {
  func.func @highway_kernel(%arg0: i32, %arg1: memref<16x128xf32, #tpu.memory_space<vmem>>, %arg2: memref<128x256xf32, #tpu.memory_space<vmem>>, %arg3: memref<1x256xf32, #tpu.memory_space<vmem>>, %arg4: memref<16x128xf32, #tpu.memory_space<vmem>>) attributes {dimension_semantics = [#tpu.dimension_semantics<parallel>], iteration_bounds = array<i64: 1>, scalar_prefetch = 0 : i64, scratch_operands = 0 : i64, tpu.core_type = #tpu.core_type<tc>, window_params = [{transform_indices = @transform_0, window_bounds = array<i64: 16, 128>}, {pipeline_mode = #tpu.pipeline_mode<synchronous>, transform_indices = @transform_1, window_bounds = array<i64: 128, 256>}, {pipeline_mode = #tpu.pipeline_mode<synchronous>, transform_indices = @transform_2, window_bounds = array<i64: 1, 256>}, {transform_indices = @transform_3, window_bounds = array<i64: 16, 128>}]} {
    %c0 = arith.constant 0 : index
    %c0_0 = arith.constant 0 : index
    %0 = vector.load %arg1[%c0, %c0_0] : memref<16x128xf32, #tpu.memory_space<vmem>>, vector<16x128xf32>
    %c0_1 = arith.constant 0 : index
    %c0_2 = arith.constant 0 : index
    %1 = vector.load %arg2[%c0_1, %c0_2] : memref<128x256xf32, #tpu.memory_space<vmem>>, vector<128x256xf32>
    %cst = arith.constant dense<0.000000e+00> : vector<16x256xf32>
    %2 = tpu.matmul %0, %1, %cst {dimension_numbers = #tpu.dot_dimension_numbers<[1], [0], [0], [1], [0, 0, 1, 1], [], []>} : vector<16x128xf32>, vector<128x256xf32>, vector<16x256xf32> -> vector<16x256xf32>
    %c0_3 = arith.constant 0 : index
    %c0_4 = arith.constant 0 : index
    %3 = vector.load %arg3[%c0_3, %c0_4] : memref<1x256xf32, #tpu.memory_space<vmem>>, vector<1x256xf32>
    %4 = vector.broadcast %3 : vector<1x256xf32> to vector<16x256xf32>
    %5 = arith.addf %2, %4 : vector<16x256xf32>
    %6 = vector.extract_strided_slice %5 {offsets = [0, 0], sizes = [16, 128], strides = [1, 1]} : vector<16x256xf32> to vector<16x128xf32>
    %cst_5 = arith.constant 0.000000e+00 : f32
    %7 = vector.broadcast %cst_5 : f32 to vector<16x128xf32>
    %8 = arith.maximumf %6, %7 : vector<16x128xf32>
    %9 = vector.extract_strided_slice %5 {offsets = [0, 128], sizes = [16, 128], strides = [1, 1]} : vector<16x256xf32> to vector<16x128xf32>
    %10 = arith.negf %9 : vector<16x128xf32>
    %11 = math.exp %10 : vector<16x128xf32>
    %cst_6 = arith.constant 1.000000e+00 : f32
    %12 = vector.broadcast %cst_6 : f32 to vector<16x128xf32>
    %13 = arith.addf %12, %11 : vector<16x128xf32>
    %14 = arith.divf %12, %13 : vector<16x128xf32>
    %15 = arith.mulf %8, %14 : vector<16x128xf32>
    %cst_7 = arith.constant 1.000000e+00 : f32
    %16 = vector.broadcast %cst_7 : f32 to vector<16x128xf32>
    %17 = arith.subf %16, %14 : vector<16x128xf32>
    %18 = arith.mulf %17, %0 : vector<16x128xf32>
    %19 = arith.addf %15, %18 : vector<16x128xf32>
    %c0_8 = arith.constant 0 : index
    %c0_9 = arith.constant 0 : index
    %20 = vector.load %arg4[%c0_8, %c0_9] : memref<16x128xf32, #tpu.memory_space<vmem>>, vector<16x128xf32>
    tpu.vector_store %arg4[%c0_8, %c0_9], %19 {strides = array<i32>} : memref<16x128xf32, #tpu.memory_space<vmem>>, vector<16x128xf32>,
    return
  }
  func.func @transform_0(%arg0: i32) -> (i32, i32) {
    %c0_i32 = arith.constant 0 : i32
    %c0_i32_0 = arith.constant 0 : i32
    return %arg0, %c0_i32 : i32, i32
  }
  func.func @transform_1(%arg0: i32) -> (i32, i32) {
    %c0_i32 = arith.constant 0 : i32
    %c0_i32_0 = arith.constant 0 : i32
    %c0_i32_1 = arith.constant 0 : i32
    return %c0_i32, %c0_i32_0 : i32, i32
  }
  func.func @transform_2(%arg0: i32) -> (i32, i32) {
    %c0_i32 = arith.constant 0 : i32
    %c0_i32_0 = arith.constant 0 : i32
    %c0_i32_1 = arith.constant 0 : i32
    return %c0_i32, %c0_i32_0 : i32, i32
  }
  func.func @transform_3(%arg0: i32) -> (i32, i32) {
    %c0_i32 = arith.constant 0 : i32
    %c0_i32_0 = arith.constant 0 : i32
    return %arg0, %c0_i32 : i32, i32
  }
}

module attributes {stable_mosaic.version = 11 : i64} {
  func.func @highway_kernel(%arg0: i32, %arg1: memref<16x128xf32, #tpu.memory_space<vmem>>, %arg2: memref<128x256xf32, #tpu.memory_space<vmem>>, %arg3: memref<1x256xf32, #tpu.memory_space<vmem>>, %arg4: memref<16x128xf32, #tpu.memory_space<vmem>>) attributes {dimension_semantics = [#tpu.dimension_semantics<parallel>], iteration_bounds = array<i64: 1>, scalar_prefetch = 0 : i64, scratch_operands = 0 : i64, tpu.core_type = #tpu.core_type<tc>, window_params = [{transform_indices = @transform_0, window_bounds = array<i64: 16, 128>}, {pipeline_mode = #tpu.pipeline_mode<synchronous>, transform_indices = @transform_1, window_bounds = array<i64: 128, 256>}, {pipeline_mode = #tpu.pipeline_mode<synchronous>, transform_indices = @transform_2, window_bounds = array<i64: 1, 256>}, {transform_indices = @transform_3, window_bounds = array<i64: 16, 128>}]} {
    %c0 = arith.constant 0 : index
    %c0_0 = arith.constant 0 : index
    %0 = vector.load %arg1[%c0, %c0_0] : memref<16x128xf32, #tpu.memory_space<vmem>>, vector<16x128xf32>
    %c0_1 = arith.constant 0 : index
    %c0_2 = arith.constant 0 : index
    %1 = vector.load %arg2[%c0_1, %c0_2] : memref<128x256xf32, #tpu.memory_space<vmem>>, vector<128x256xf32>
    %cst = arith.constant dense<0.000000e+00> : vector<16x256xf32>
    %2 = tpu.matmul %0, %1, %cst {dimension_numbers = #tpu.dot_dimension_numbers<[1], [0], [0], [1], [0, 0, 1, 1], [], []>} : vector<16x128xf32>, vector<128x256xf32>, vector<16x256xf32> -> vector<16x256xf32>
    %c0_3 = arith.constant 0 : index
    %c0_4 = arith.constant 0 : index
    %3 = vector.load %arg3[%c0_3, %c0_4] : memref<1x256xf32, #tpu.memory_space<vmem>>, vector<1x256xf32>
    %4 = vector.broadcast %3 : vector<1x256xf32> to vector<16x256xf32>
    %5 = arith.addf %2, %4 : vector<16x256xf32>
    %6 = vector.extract_strided_slice %5 {offsets = [0, 0], sizes = [16, 128], strides = [1, 1]} : vector<16x256xf32> to vector<16x128xf32>
    %cst_5 = arith.constant 0.000000e+00 : f32
    %7 = vector.broadcast %cst_5 : f32 to vector<16x128xf32>
    %8 = arith.maximumf %6, %7 : vector<16x128xf32>
    %9 = vector.extract_strided_slice %5 {offsets = [0, 128], sizes = [16, 128], strides = [1, 1]} : vector<16x256xf32> to vector<16x128xf32>
    %10 = arith.negf %9 : vector<16x128xf32>
    %11 = math.exp %10 : vector<16x128xf32>
    %cst_6 = arith.constant 1.000000e+00 : f32
    %12 = vector.broadcast %cst_6 : f32 to vector<16x128xf32>
    %13 = arith.addf %12, %11 : vector<16x128xf32>
    %14 = arith.divf %12, %13 : vector<16x128xf32>
    %15 = arith.mulf %8, %14 : vector<16x128xf32>
    %cst_7 = arith.constant 1.000000e+00 : f32
    %16 = vector.broadcast %cst_7 : f32 to vector<16x128xf32>
    %17 = arith.subf %16, %14 : vector<16x128xf32>
    %18 = arith.mulf %17, %0 : vector<16x128xf32>
    %19 = arith.addf %15, %18 : vector<16x128xf32>
    %c0_8 = arith.constant 0 : index
    %c0_9 = arith.constant 0 : index
    %20 = vector.load %arg4[%c0_8, %c0_9] : memref<16x128xf32, #tpu.memory_space<vmem>>, vector<16x128xf32>
    tpu.vector_store %arg4[%c0_8, %c0_9], %19 {strides = array<i32>} : memref<16x128xf32, #tpu.memory_space<vmem>>, vector<16x128xf32>,
    return
  }
  func.func @transform_0(%arg0: i32) -> (i32, i32) {
    %c0_i32 = arith.constant 0 : i32
    %c0_i32_0 = arith.constant 0 : i32
    return %arg0, %c0_i32 : i32, i32
  }
  func.func @transform_1(%arg0: i32) -> (i32, i32) {
    %c0_i32 = arith.constant 0 : i32
    %c0_i32_0 = arith.constant 0 : i32
    %c0_i32_1 = arith.constant 0 : i32
    return %c0_i32, %c0_i32_0 : i32, i32
  }
  func.func @transform_2(%arg0: i32) -> (i32, i32) {
    %c0_i32 = arith.constant 0 : i32
    %c0_i32_0 = arith.constant 0 : i32
    %c0_i32_1 = arith.constant 0 : i32
    return %c0_i32, %c0_i32_0 : i32, i32
  }
  func.func @transform_3(%arg0: i32) -> (i32, i32) {
    %c0_i32 = arith.constant 0 : i32
    %c0_i32_0 = arith.constant 0 : i32
    return %arg0, %c0_i32 : i32, i32
  }
}

</mosaic_0001>

<bundles_post_ra>
// kernel: tpu_custom_call.1
= control target key start
LH: loop header
LB: loop body
LE: loop exit
PB: predicated region body
PF: predicated region fallthrough
CT: control target
= control target key end

     0   :  { %8 = vsyncpa [#allocation3], 0  ;;  %s424_s0 = inlined_call_operand.hbm [shape: f32[16,128], index: 0, kind: input, shape index: {}]   ;;  %s425_s1 = inlined_call_operand.hbm [shape: f32[128,256], index: 1, kind: input, shape index: {}]   ;;  %s426_s2 = inlined_call_operand.hbm [shape: f32[1,256], index: 2, kind: input, shape index: {}]   ;;  %s427_s3 = inlined_call_operand.hbm [shape: f32[16,128], index: 3, kind: output, shape index: {}]  }
   0x1   :  { %9 = vsyncpa [#allocation6], 0  ;;  %s28_s14 = sshll.u32 %s425_s1, 4  ;;  %s29_s14 = int_to_ptr.hbm [resolvable:$true] %s28_s14 }
   0x2   :  { %10 = vsyncpa [#allocation4], 0  ;;  %s368_s15 = smov [#allocation5]   ;;  %s15_s19 = sshll.u32 %s424_s0, 4  ;;  %s16_s19 = int_to_ptr.hbm [resolvable:$true] %s15_s19 }
   0x3   :  { %s30_s16 = sshll.u32 %s368_s15, 4  ;;  %s369_s20 = smov 256   ;;  %s31_s16 = int_to_ptr.vmem [resolvable:$true] %s30_s16 }
   0x4   :  { %s370_s21 = smov 16   ;;  %s371_s22 = smov [#allocation2]  }
   0x5   :  { %36 = dma.hbm_to_vmem [thread:$0]  %s29_s14, 4096, %s31_s16, [#allocation6], %s369_s20, %s369_s20, %s370_s21  }
   0x6   :  { %s17_s23 = sshll.u32 %s371_s22, 4  ;;  %s372_s24 = smov 128   ;;  %s18_s23 = int_to_ptr.vmem [resolvable:$true] %s17_s23 }
   0x7   :  { %s373_s25 = smov 8   ;;  %s42_s27 = sshll.u32 %s426_s2, 4  ;;  %s43_s27 = int_to_ptr.hbm [resolvable:$true] %s42_s27 }
   0x8   :  { %23 = dma.hbm_to_vmem [thread:$0]  %s16_s19, 256, %s18_s23, [#allocation3], %s372_s24, %s372_s24, %s373_s25  }
   0x9   :  { %s374_s28 = smov [#allocation7]  }
   0xa   :  { %s44_s0 = sshll.u32 %s374_s28, 4  ;;  %s45_s0 = int_to_ptr.vmem [resolvable:$true] %s44_s0 }
   0xb   :  { %47 = dma.hbm_to_vmem [thread:$0]  %s43_s27, 32, %s45_s0, [#allocation6]  }
   0xc   :  { %362 = dma.done.wait [#allocation3], 256  }
   0xd   :  { %363 = vsyncadd [#allocation3], 4294967040 }
   0xe   :  { %364 = dma.done.wait [#allocation6], 4128  }
   0xf   :  { %365 = vsyncadd [#allocation6], 4294963168  ;;  %v93_v0 = vld [vmem:[#allocation5 + $0xf8] sm:$0xff]  ;;  %v91_v1 = vld [vmem:[#allocation5 + $0xe8] sm:$0xff]  ;;  %s375_s2 = smov [#allocation8]   ;;  %s202_s5 = sshll.u32 %s427_s3, 4  ;;  %s203_s5 = int_to_ptr.hbm [resolvable:$true] %s202_s5 }
  0x10   :  { %123 = vmatpush.msra.mxu1 %v93_v0  ;;  %234 = vmatpush.msra.mxu3 %v93_v0  ;;  %v89_v2 = vld [vmem:[#allocation5 + $0xd8] sm:$0xff]  ;;  %v87_v3 = vld [vmem:[#allocation5 + $0xc8] sm:$0xff]  ;;  %v92_v4 = vld [vmem:[#allocation5 + $0xf0] sm:$0xff]  ;;  %s200_s29 = sshll.u32 %s375_s2, 4  ;;  %s201_s29 = int_to_ptr.vmem [resolvable:$true] %s200_s29 }
  0x11   :  { %v90_v5 = vld [vmem:[#allocation5 + $0xe0] sm:$0xff]  ;;  %v85_v6 = vld [vmem:[#allocation5 + $0xb8] sm:$0xff]  ;;  %100 = vmatpush.msra.mxu0 %v92_v4  ;;  %218 = vmatpush.msra.mxu2 %v92_v4  ;;  %v88_v7 = vld [vmem:[#allocation5 + $0xd0] sm:$0xff] }
  0x12   :  { %124 = vmatpush.msra.mxu1 %v91_v1  ;;  %235 = vmatpush.msra.mxu3 %v91_v1  ;;  %v83_v8 = vld [vmem:[#allocation5 + $0xa8] sm:$0xff]  ;;  %v86_v9 = vld [vmem:[#allocation5 + $0xc0] sm:$0xff]  ;;  %v81_v10 = vld [vmem:[#allocation5 + $0x98] sm:$0xff] }
  0x13   :  { %101 = vmatpush.msra.mxu0 %v90_v5  ;;  %219 = vmatpush.msra.mxu2 %v90_v5  ;;  %v84_v11 = vld [vmem:[#allocation5 + $0xb0] sm:$0xff]  ;;  %v79_v12 = vld [vmem:[#allocation5 + $0x88] sm:$0xff]  ;;  %v82_v13 = vld [vmem:[#allocation5 + $0xa0] sm:$0xff] }
  0x14   :  { %125 = vmatpush.msra.mxu1 %v89_v2  ;;  %236 = vmatpush.msra.mxu3 %v89_v2  ;;  %v77_v14 = vld [vmem:[#allocation5 + $0x78] sm:$0xff]  ;;  %v80_v15 = vld [vmem:[#allocation5 + $0x90] sm:$0xff]  ;;  %v75_v16 = vld [vmem:[#allocation5 + $0x68] sm:$0xff] }
  0x15   :  { %102 = vmatpush.msra.mxu0 %v88_v7  ;;  %220 = vmatpush.msra.mxu2 %v88_v7  ;;  %v78_v17 = vld [vmem:[#allocation5 + $0x80] sm:$0xff]  ;;  %v73_v18 = vld [vmem:[#allocation5 + $0x58] sm:$0xff]  ;;  %v76_v19 = vld [vmem:[#allocation5 + $0x70] sm:$0xff] }
  0x16   :  { %126 = vmatpush.msra.mxu1 %v87_v3  ;;  %237 = vmatpush.msra.mxu3 %v87_v3  ;;  %v71_v20 = vld [vmem:[#allocation5 + $0x48] sm:$0xff]  ;;  %v74_v21 = vld [vmem:[#allocation5 + $0x60] sm:$0xff]  ;;  %v69_v22 = vld [vmem:[#allocation5 + $0x38] sm:$0xff] }
  0x17   :  { %103 = vmatpush.msra.mxu0 %v86_v9  ;;  %221 = vmatpush.msra.mxu2 %v86_v9  ;;  %v72_v23 = vld [vmem:[#allocation5 + $0x50] sm:$0xff]  ;;  %v67_v24 = vld [vmem:[#allocation5 + $0x28] sm:$0xff]  ;;  %v70_v25 = vld [vmem:[#allocation5 + $0x40] sm:$0xff] }
  0x18   :  { %127 = vmatpush.msra.mxu1 %v85_v6  ;;  %238 = vmatpush.msra.mxu3 %v85_v6  ;;  %v65_v26 = vld [vmem:[#allocation5 + $0x18] sm:$0xff]  ;;  %v68_v27 = vld [vmem:[#allocation5 + $0x30] sm:$0xff]  ;;  %v63_v28 = vld [vmem:[#allocation5 + $0x8] sm:$0xff] }
  0x19   :  { %104 = vmatpush.msra.mxu0 %v84_v11  ;;  %222 = vmatpush.msra.mxu2 %v84_v11  ;;  %v408_v29 = vld [vmem:[#allocation2] sm:$0xff]  ;;  %v410_v30 = vld [vmem:[#allocation2 + $0x8] sm:$0xff]  ;;  %v66_v31 = vld [vmem:[#allocation5 + $0x20] sm:$0xff] }
  0x1a   :  { %128 = vmatpush.msra.mxu1 %v83_v8  ;;  %239 = vmatpush.msra.mxu3 %v83_v8  ;;  %v64_v32 = vld [vmem:[#allocation5 + $0x10] sm:$0xff]  ;;  %v62_v33 = vld [vmem:[#allocation5] sm:$0xff] }
  0x1b   :  { %105 = vmatpush.msra.mxu0 %v82_v13  ;;  %223 = vmatpush.msra.mxu2 %v82_v13  ;;  %v94_v34 = vld [vmem:[#allocation7] sm:$0x3] }
  0x1c   :  { %129 = vmatpush.msra.mxu1 %v81_v10  ;;  %240 = vmatpush.msra.mxu3 %v81_v10  ;;  %v97_v35 = vperm.slane %v94_v34, 1  ;;  %v96_v47 = vperm.slane %v94_v34, 0 }
  0x1d   :  { %106 = vmatpush.msra.mxu0 %v80_v15  ;;  %224 = vmatpush.msra.mxu2 %v80_v15 }
  0x1e   :  { %130 = vmatpush.msra.mxu1 %v79_v12  ;;  %241 = vmatpush.msra.mxu3 %v79_v12 }
  0x1f   :  { %107 = vmatpush.msra.mxu0 %v78_v17  ;;  %225 = vmatpush.msra.mxu2 %v78_v17 }
  0x20   :  { %131 = vmatpush.msra.mxu1 %v77_v14  ;;  %242 = vmatpush.msra.mxu3 %v77_v14 }
  0x21   :  { %108 = vmatpush.msra.mxu0 %v76_v19  ;;  %226 = vmatpush.msra.mxu2 %v76_v19 }
  0x22   :  { %132 = vmatpush.msra.mxu1 %v75_v16  ;;  %243 = vmatpush.msra.mxu3 %v75_v16 }
  0x23   :  { %109 = vmatpush.msra.mxu0 %v74_v21  ;;  %227 = vmatpush.msra.mxu2 %v74_v21 }
  0x24   :  { %133 = vmatpush.msra.mxu1 %v73_v18  ;;  %244 = vmatpush.msra.mxu3 %v73_v18 }
  0x25   :  { %110 = vmatpush.msra.mxu0 %v72_v23  ;;  %228 = vmatpush.msra.mxu2 %v72_v23 }
  0x26   :  { %134 = vmatpush.msra.mxu1 %v71_v20  ;;  %245 = vmatpush.msra.mxu3 %v71_v20 }
  0x27   :  { %111 = vmatpush.msra.mxu0 %v70_v25  ;;  %229 = vmatpush.msra.mxu2 %v70_v25 }
  0x28   :  { %135 = vmatpush.msra.mxu1 %v69_v22  ;;  %246 = vmatpush.msra.mxu3 %v69_v22 }
  0x29   :  { %112 = vmatpush.msra.mxu0 %v68_v27  ;;  %230 = vmatpush.msra.mxu2 %v68_v27 }
  0x2a   :  { %136 = vmatpush.msra.mxu1 %v67_v24  ;;  %247 = vmatpush.msra.mxu3 %v67_v24 }
  0x2b   :  { %113 = vmatpush.msra.mxu0 %v66_v31  ;;  %231 = vmatpush.msra.mxu2 %v66_v31 }
  0x2c   :  { %137 = vmatpush.msra.mxu1 %v65_v26  ;;  %248 = vmatpush.msra.mxu3 %v65_v26 }
  0x2d   :  { %114 = vmatpush.msra.mxu0 %v64_v32  ;;  %232 = vmatpush.msra.mxu2 %v64_v32 }
  0x2e   :  { %138 = vmatpush.msra.mxu1 %v63_v28  ;;  %249 = vmatpush.msra.mxu3 %v63_v28 }
  0x2f   :  { %139 = vmatmul.f32.vlgmr.msra.gmra.mxu1 %v408_v29  ;;  %142 = vmatmul.f32.vlgmr.msra.gmra.mxu3 %v410_v30 }
  0x30   :  { %115 = vmatpush.msra.mxu0 %v62_v33  ;;  %233 = vmatpush.msra.mxu2 %v62_v33 }
  0x31   :  { %116 = vmatmul.f32.vlgmr.msra.gmra.mxu0 %v408_v29  ;;  %119 = vmatmul.f32.vlgmr.msra.gmra.mxu2 %v410_v30 }
  0xac   :  { %v140_v36 = vpop.f32.mrf.mxu1 }
  0xad   :  { %v141_v37 = vadd.f32 %v140_v36, %v97_v35 }
  0xae   :  { %v117_v48 = vpop.f32.mrf.mxu0 }
  0xaf   :  { %v216_v38 = vmul.f32 -1.442695, %v141_v37  ;;  %v118_v51 = vadd.f32 %v117_v48, %v96_v47 }
  0xb1   :  { %258 = vpow2.f32 %v216_v38  ;;  %v146_v60 = vmax.f32 %v118_v51, 0.0 }
  0xb2   :  { %v143_v39 = vpop.f32.mrf.mxu3 }
  0xb3   :  { %v144_v40 = vadd.f32 %v143_v39, %v97_v35 }
  0xb4   :  { %v120_v57 = vpop.f32.mrf.mxu2 }
  0xb5   :  { %v217_v41 = vmul.f32 -1.442695, %v144_v40  ;;  %v121_v0 = vadd.f32 %v120_v57, %v96_v47 }
  0xb7   :  { %v259_v42 = vpop.eup %258  ;;  %260 = vpow2.f32 %v217_v41  ;;  %v147_v10 = vmax.f32 %v121_v0, 0.0 }
  0xb8   :  { %v154_v43 = vadd.f32 1.0, %v259_v42 }
  0xba   :  { %262 = vrcp.f32 %v154_v43  ;;  %v167_v52 = vand.u32 2147483648, %v154_v43  ;;  %vm161_vm0 = vweird.f32 %v154_v43  ;;  %v165_v54 = vand.u32 2147483647, %v154_v43 }
  0xbc   :  { %v168_v59 = vor.u32 1.1754944e-38, %v167_v52  ;;  %vm166_vm3 = vcmp.eq.f32.partialorder %v165_v54, 8.507059e+37 }
  0xbd   :  { %v261_v44 = vpop.eup %260 }
  0xbe   :  { %v155_v45 = vadd.f32 1.0, %v261_v44 }
  0xc0   :  { %v263_v46 = vpop.eup %262  ;;  %264 = vrcp.f32 %v155_v45  ;;  %v182_v1 = vand.u32 2147483648, %v155_v45  ;;  %v180_v4 = vand.u32 2147483647, %v155_v45  ;;  %vm176_vm5 = vweird.f32 %v155_v45 }
  0xc1   :  { %v157_v49 = vmul.f32 %v263_v46, %v154_v43  ;;  %vm162_vm1 = vweird.f32 %v263_v46 }
  0xc2   :  { %vm163_vm2 = vmor %vm161_vm0, %vm162_vm1  ;;  %v183_v8 = vor.u32 1.1754944e-38, %v182_v1  ;;  %vm181_vm7 = vcmp.eq.f32.partialorder %v180_v4, 8.507059e+37 }
  0xc3   :  { %v158_v50 = vsub.f32 1.0, %v157_v49 }
  0xc5   :  { %v159_v53 = vmul.f32 %v263_v46, %v158_v50 }
  0xc6   :  { %v265_v55 = vpop.eup %264 }
  0xc7   :  { %v160_v56 = vadd.f32 %v263_v46, %v159_v53  ;;  %v172_v58 = vmul.f32 %v265_v55, %v155_v45  ;;  %vm177_vm4 = vweird.f32 %v265_v55 }
  0xc8   :  { %vm178_vm6 = vmor %vm176_vm5, %vm177_vm4 }
  0xc9   :  { %v164_v61 = vsel %vm163_vm2, %v263_v46, %v160_v56  ;;  %v173_v62 = vsub.f32 1.0, %v172_v58 }
  0xca   :  { %v169_v63 = vsel %vm166_vm3, %v168_v59, %v164_v61 }
  0xcb   :  { %v188_v2 = vsub.f32 1.0, %v169_v63  ;;  %v174_v3 = vmul.f32 %v265_v55, %v173_v62  ;;  %v186_v5 = vmul.f32 %v169_v63, %v146_v60 }
  0xcd   :  { %v190_v6 = vmul.f32 %v188_v2, %v408_v29  ;;  %v175_v7 = vadd.f32 %v265_v55, %v174_v3 }
  0xcf   :  { %v192_v9 = vadd.f32 %v190_v6, %v186_v5  ;;  %v179_v11 = vsel %vm178_vm6, %v265_v55, %v175_v7 }
  0xd0   :  { %v184_v12 = vsel %vm181_vm7, %v183_v8, %v179_v11 }
  0xd1   :  { %194 = vst [vmem:[#allocation8] sm:$0xff] %v192_v9  ;;  %v189_v13 = vsub.f32 1.0, %v184_v12  ;;  %v187_v14 = vmul.f32 %v184_v12, %v147_v10 }
  0xd3   :  { %v191_v15 = vmul.f32 %v189_v13, %v410_v30 }
  0xd5   :  { %v193_v16 = vadd.f32 %v191_v15, %v187_v14 }
  0xd7   :  { %195 = vst [vmem:[#allocation8 + $0x8] sm:$0xff] %v193_v16 }
  0xd8   :  { %208 = dma.vmem_to_hbm [thread:$0]  %s201_s29, 256, %s203_s5, [#allocation4], %s372_s24, %s372_s24, %s373_s25  }
  0xd9   :  { %366 = dma.done.wait [#allocation4], 256  }
  0xda   :  { %367 = vsyncadd [#allocation4], 4294967040 }
  0xdb   :  { %213 = vsyncpa [#allocation3], 1 }
  0xdc   :  { %214 = vsyncpa [#allocation6], 1 }
  0xdd   :  { %215 = vsyncpa [#allocation4], 1 }

// kernel: tpu_custom_call.1
= control target key start
LH: loop header
LB: loop body
LE: loop exit
PB: predicated region body
PF: predicated region fallthrough
CT: control target
= control target key end

     0   :  { %8 = vsyncpa [#allocation3], 0  ;;  %s424_s0 = inlined_call_operand.hbm [shape: f32[16,128], index: 0, kind: input, shape index: {}]   ;;  %s425_s1 = inlined_call_operand.hbm [shape: f32[128,256], index: 1, kind: input, shape index: {}]   ;;  %s426_s2 = inlined_call_operand.hbm [shape: f32[1,256], index: 2, kind: input, shape index: {}]   ;;  %s427_s3 = inlined_call_operand.hbm [shape: f32[16,128], index: 3, kind: output, shape index: {}]  }
   0x1   :  { %9 = vsyncpa [#allocation6], 0  ;;  %s28_s14 = sshll.u32 %s425_s1, 4  ;;  %s29_s14 = int_to_ptr.hbm [resolvable:$true] %s28_s14 }
   0x2   :  { %10 = vsyncpa [#allocation4], 0  ;;  %s368_s15 = smov [#allocation5]   ;;  %s15_s19 = sshll.u32 %s424_s0, 4  ;;  %s16_s19 = int_to_ptr.hbm [resolvable:$true] %s15_s19 }
   0x3   :  { %s30_s16 = sshll.u32 %s368_s15, 4  ;;  %s369_s20 = smov 256   ;;  %s31_s16 = int_to_ptr.vmem [resolvable:$true] %s30_s16 }
   0x4   :  { %s370_s21 = smov 16   ;;  %s371_s22 = smov [#allocation2]  }
   0x5   :  { %36 = dma.hbm_to_vmem [thread:$0]  %s29_s14, 4096, %s31_s16, [#allocation6], %s369_s20, %s369_s20, %s370_s21  }
   0x6   :  { %s17_s23 = sshll.u32 %s371_s22, 4  ;;  %s372_s24 = smov 128   ;;  %s18_s23 = int_to_ptr.vmem [resolvable:$true] %s17_s23 }
   0x7   :  { %s373_s25 = smov 8   ;;  %s42_s27 = sshll.u32 %s426_s2, 4  ;;  %s43_s27 = int_to_ptr.hbm [resolvable:$true] %s42_s27 }
   0x8   :  { %23 = dma.hbm_to_vmem [thread:$0]  %s16_s19, 256, %s18_s23, [#allocation3], %s372_s24, %s372_s24, %s373_s25  }
   0x9   :  { %s374_s28 = smov [#allocation7]  }
   0xa   :  { %s44_s0 = sshll.u32 %s374_s28, 4  ;;  %s45_s0 = int_to_ptr.vmem [resolvable:$true] %s44_s0 }
   0xb   :  { %47 = dma.hbm_to_vmem [thread:$0]  %s43_s27, 32, %s45_s0, [#allocation6]  }
   0xc   :  { %362 = dma.done.wait [#allocation3], 256  }
   0xd   :  { %363 = vsyncadd [#allocation3], 4294967040 }
   0xe   :  { %364 = dma.done.wait [#allocation6], 4128  }
   0xf   :  { %365 = vsyncadd [#allocation6], 4294963168  ;;  %v93_v0 = vld [vmem:[#allocation5 + $0xf8] sm:$0xff]  ;;  %v91_v1 = vld [vmem:[#allocation5 + $0xe8] sm:$0xff]  ;;  %s375_s2 = smov [#allocation8]   ;;  %s202_s5 = sshll.u32 %s427_s3, 4  ;;  %s203_s5 = int_to_ptr.hbm [resolvable:$true] %s202_s5 }
  0x10   :  { %123 = vmatpush.msra.mxu1 %v93_v0  ;;  %234 = vmatpush.msra.mxu3 %v93_v0  ;;  %v89_v2 = vld [vmem:[#allocation5 + $0xd8] sm:$0xff]  ;;  %v87_v3 = vld [vmem:[#allocation5 + $0xc8] sm:$0xff]  ;;  %v92_v4 = vld [vmem:[#allocation5 + $0xf0] sm:$0xff]  ;;  %s200_s29 = sshll.u32 %s375_s2, 4  ;;  %s201_s29 = int_to_ptr.vmem [resolvable:$true] %s200_s29 }
  0x11   :  { %v90_v5 = vld [vmem:[#allocation5 + $0xe0] sm:$0xff]  ;;  %v85_v6 = vld [vmem:[#allocation5 + $0xb8] sm:$0xff]  ;;  %100 = vmatpush.msra.mxu0 %v92_v4  ;;  %218 = vmatpush.msra.mxu2 %v92_v4  ;;  %v88_v7 = vld [vmem:[#allocation5 + $0xd0] sm:$0xff] }
  0x12   :  { %124 = vmatpush.msra.mxu1 %v91_v1  ;;  %235 = vmatpush.msra.mxu3 %v91_v1  ;;  %v83_v8 = vld [vmem:[#allocation5 + $0xa8] sm:$0xff]  ;;  %v86_v9 = vld [vmem:[#allocation5 + $0xc0] sm:$0xff]  ;;  %v81_v10 = vld [vmem:[#allocation5 + $0x98] sm:$0xff] }
  0x13   :  { %101 = vmatpush.msra.mxu0 %v90_v5  ;;  %219 = vmatpush.msra.mxu2 %v90_v5  ;;  %v84_v11 = vld [vmem:[#allocation5 + $0xb0] sm:$0xff]  ;;  %v79_v12 = vld [vmem:[#allocation5 + $0x88] sm:$0xff]  ;;  %v82_v13 = vld [vmem:[#allocation5 + $0xa0] sm:$0xff] }
  0x14   :  { %125 = vmatpush.msra.mxu1 %v89_v2  ;;  %236 = vmatpush.msra.mxu3 %v89_v2  ;;  %v77_v14 = vld [vmem:[#allocation5 + $0x78] sm:$0xff]  ;;  %v80_v15 = vld [vmem:[#allocation5 + $0x90] sm:$0xff]  ;;  %v75_v16 = vld [vmem:[#allocation5 + $0x68] sm:$0xff] }
  0x15   :  { %102 = vmatpush.msra.mxu0 %v88_v7  ;;  %220 = vmatpush.msra.mxu2 %v88_v7  ;;  %v78_v17 = vld [vmem:[#allocation5 + $0x80] sm:$0xff]  ;;  %v73_v18 = vld [vmem:[#allocation5 + $0x58] sm:$0xff]  ;;  %v76_v19 = vld [vmem:[#allocation5 + $0x70] sm:$0xff] }
  0x16   :  { %126 = vmatpush.msra.mxu1 %v87_v3  ;;  %237 = vmatpush.msra.mxu3 %v87_v3  ;;  %v71_v20 = vld [vmem:[#allocation5 + $0x48] sm:$0xff]  ;;  %v74_v21 = vld [vmem:[#allocation5 + $0x60] sm:$0xff]  ;;  %v69_v22 = vld [vmem:[#allocation5 + $0x38] sm:$0xff] }
  0x17   :  { %103 = vmatpush.msra.mxu0 %v86_v9  ;;  %221 = vmatpush.msra.mxu2 %v86_v9  ;;  %v72_v23 = vld [vmem:[#allocation5 + $0x50] sm:$0xff]  ;;  %v67_v24 = vld [vmem:[#allocation5 + $0x28] sm:$0xff]  ;;  %v70_v25 = vld [vmem:[#allocation5 + $0x40] sm:$0xff] }
  0x18   :  { %127 = vmatpush.msra.mxu1 %v85_v6  ;;  %238 = vmatpush.msra.mxu3 %v85_v6  ;;  %v65_v26 = vld [vmem:[#allocation5 + $0x18] sm:$0xff]  ;;  %v68_v27 = vld [vmem:[#allocation5 + $0x30] sm:$0xff]  ;;  %v63_v28 = vld [vmem:[#allocation5 + $0x8] sm:$0xff] }
  0x19   :  { %104 = vmatpush.msra.mxu0 %v84_v11  ;;  %222 = vmatpush.msra.mxu2 %v84_v11  ;;  %v408_v29 = vld [vmem:[#allocation2] sm:$0xff]  ;;  %v410_v30 = vld [vmem:[#allocation2 + $0x8] sm:$0xff]  ;;  %v66_v31 = vld [vmem:[#allocation5 + $0x20] sm:$0xff] }
  0x1a   :  { %128 = vmatpush.msra.mxu1 %v83_v8  ;;  %239 = vmatpush.msra.mxu3 %v83_v8  ;;  %v64_v32 = vld [vmem:[#allocation5 + $0x10] sm:$0xff]  ;;  %v62_v33 = vld [vmem:[#allocation5] sm:$0xff] }
  0x1b   :  { %105 = vmatpush.msra.mxu0 %v82_v13  ;;  %223 = vmatpush.msra.mxu2 %v82_v13  ;;  %v94_v34 = vld [vmem:[#allocation7] sm:$0x3] }
  0x1c   :  { %129 = vmatpush.msra.mxu1 %v81_v10  ;;  %240 = vmatpush.msra.mxu3 %v81_v10  ;;  %v97_v35 = vperm.slane %v94_v34, 1  ;;  %v96_v47 = vperm.slane %v94_v34, 0 }
  0x1d   :  { %106 = vmatpush.msra.mxu0 %v80_v15  ;;  %224 = vmatpush.msra.mxu2 %v80_v15 }
  0x1e   :  { %130 = vmatpush.msra.mxu1 %v79_v12  ;;  %241 = vmatpush.msra.mxu3 %v79_v12 }
  0x1f   :  { %107 = vmatpush.msra.mxu0 %v78_v17  ;;  %225 = vmatpush.msra.mxu2 %v78_v17 }
  0x20   :  { %131 = vmatpush.msra.mxu1 %v77_v14  ;;  %242 = vmatpush.msra.mxu3 %v77_v14 }
  0x21   :  { %108 = vmatpush.msra.mxu0 %v76_v19  ;;  %226 = vmatpush.msra.mxu2 %v76_v19 }
  0x22   :  { %132 = vmatpush.msra.mxu1 %v75_v16  ;;  %243 = vmatpush.msra.mxu3 %v75_v16 }
  0x23   :  { %109 = vmatpush.msra.mxu0 %v74_v21  ;;  %227 = vmatpush.msra.mxu2 %v74_v21 }
  0x24   :  { %133 = vmatpush.msra.mxu1 %v73_v18  ;;  %244 = vmatpush.msra.mxu3 %v73_v18 }
  0x25   :  { %110 = vmatpush.msra.mxu0 %v72_v23  ;;  %228 = vmatpush.msra.mxu2 %v72_v23 }
  0x26   :  { %134 = vmatpush.msra.mxu1 %v71_v20  ;;  %245 = vmatpush.msra.mxu3 %v71_v20 }
  0x27   :  { %111 = vmatpush.msra.mxu0 %v70_v25  ;;  %229 = vmatpush.msra.mxu2 %v70_v25 }
  0x28   :  { %135 = vmatpush.msra.mxu1 %v69_v22  ;;  %246 = vmatpush.msra.mxu3 %v69_v22 }
  0x29   :  { %112 = vmatpush.msra.mxu0 %v68_v27  ;;  %230 = vmatpush.msra.mxu2 %v68_v27 }
  0x2a   :  { %136 = vmatpush.msra.mxu1 %v67_v24  ;;  %247 = vmatpush.msra.mxu3 %v67_v24 }
  0x2b   :  { %113 = vmatpush.msra.mxu0 %v66_v31  ;;  %231 = vmatpush.msra.mxu2 %v66_v31 }
  0x2c   :  { %137 = vmatpush.msra.mxu1 %v65_v26  ;;  %248 = vmatpush.msra.mxu3 %v65_v26 }
  0x2d   :  { %114 = vmatpush.msra.mxu0 %v64_v32  ;;  %232 = vmatpush.msra.mxu2 %v64_v32 }
  0x2e   :  { %138 = vmatpush.msra.mxu1 %v63_v28  ;;  %249 = vmatpush.msra.mxu3 %v63_v28 }
  0x2f   :  { %139 = vmatmul.f32.vlgmr.msra.gmra.mxu1 %v408_v29  ;;  %142 = vmatmul.f32.vlgmr.msra.gmra.mxu3 %v410_v30 }
  0x30   :  { %115 = vmatpush.msra.mxu0 %v62_v33  ;;  %233 = vmatpush.msra.mxu2 %v62_v33 }
  0x31   :  { %116 = vmatmul.f32.vlgmr.msra.gmra.mxu0 %v408_v29  ;;  %119 = vmatmul.f32.vlgmr.msra.gmra.mxu2 %v410_v30 }
  0xac   :  { %v140_v36 = vpop.f32.mrf.mxu1 }
  0xad   :  { %v141_v37 = vadd.f32 %v140_v36, %v97_v35 }
  0xae   :  { %v117_v48 = vpop.f32.mrf.mxu0 }
  0xaf   :  { %v216_v38 = vmul.f32 -1.442695, %v141_v37  ;;  %v118_v51 = vadd.f32 %v117_v48, %v96_v47 }
  0xb1   :  { %258 = vpow2.f32 %v216_v38  ;;  %v146_v60 = vmax.f32 %v118_v51, 0.0 }
  0xb2   :  { %v143_v39 = vpop.f32.mrf.mxu3 }
  0xb3   :  { %v144_v40 = vadd.f32 %v143_v39, %v97_v35 }
  0xb4   :  { %v120_v57 = vpop.f32.mrf.mxu2 }
  0xb5   :  { %v217_v41 = vmul.f32 -1.442695, %v144_v40  ;;  %v121_v0 = vadd.f32 %v120_v57, %v96_v47 }
  0xb7   :  { %v259_v42 = vpop.eup %258  ;;  %260 = vpow2.f32 %v217_v41  ;;  %v147_v10 = vmax.f32 %v121_v0, 0.0 }
  0xb8   :  { %v154_v43 = vadd.f32 1.0, %v259_v42 }
  0xba   :  { %262 = vrcp.f32 %v154_v43  ;;  %v167_v52 = vand.u32 2147483648, %v154_v43  ;;  %vm161_vm0 = vweird.f32 %v154_v43  ;;  %v165_v54 = vand.u32 2147483647, %v154_v43 }
  0xbc   :  { %v168_v59 = vor.u32 1.1754944e-38, %v167_v52  ;;  %vm166_vm3 = vcmp.eq.f32.partialorder %v165_v54, 8.507059e+37 }
  0xbd   :  { %v261_v44 = vpop.eup %260 }
  0xbe   :  { %v155_v45 = vadd.f32 1.0, %v261_v44 }
  0xc0   :  { %v263_v46 = vpop.eup %262  ;;  %264 = vrcp.f32 %v155_v45  ;;  %v182_v1 = vand.u32 2147483648, %v155_v45  ;;  %v180_v4 = vand.u32 2147483647, %v155_v45  ;;  %vm176_vm5 = vweird.f32 %v155_v45 }
  0xc1   :  { %v157_v49 = vmul.f32 %v263_v46, %v154_v43  ;;  %vm162_vm1 = vweird.f32 %v263_v46 }
  0xc2   :  { %vm163_vm2 = vmor %vm161_vm0, %vm162_vm1  ;;  %v183_v8 = vor.u32 1.1754944e-38, %v182_v1  ;;  %vm181_vm7 = vcmp.eq.f32.partialorder %v180_v4, 8.507059e+37 }
  0xc3   :  { %v158_v50 = vsub.f32 1.0, %v157_v49 }
  0xc5   :  { %v159_v53 = vmul.f32 %v263_v46, %v158_v50 }
  0xc6   :  { %v265_v55 = vpop.eup %264 }
  0xc7   :  { %v160_v56 = vadd.f32 %v263_v46, %v159_v53  ;;  %v172_v58 = vmul.f32 %v265_v55, %v155_v45  ;;  %vm177_vm4 = vweird.f32 %v265_v55 }
  0xc8   :  { %vm178_vm6 = vmor %vm176_vm5, %vm177_vm4 }
  0xc9   :  { %v164_v61 = vsel %vm163_vm2, %v263_v46, %v160_v56  ;;  %v173_v62 = vsub.f32 1.0, %v172_v58 }
  0xca   :  { %v169_v63 = vsel %vm166_vm3, %v168_v59, %v164_v61 }
  0xcb   :  { %v188_v2 = vsub.f32 1.0, %v169_v63  ;;  %v174_v3 = vmul.f32 %v265_v55, %v173_v62  ;;  %v186_v5 = vmul.f32 %v169_v63, %v146_v60 }
  0xcd   :  { %v190_v6 = vmul.f32 %v188_v2, %v408_v29  ;;  %v175_v7 = vadd.f32 %v265_v55, %v174_v3 }
  0xcf   :  { %v192_v9 = vadd.f32 %v190_v6, %v186_v5  ;;  %v179_v11 = vsel %vm178_vm6, %v265_v55, %v175_v7 }
  0xd0   :  { %v184_v12 = vsel %vm181_vm7, %v183_v8, %v179_v11 }
  0xd1   :  { %194 = vst [vmem:[#allocation8] sm:$0xff] %v192_v9  ;;  %v189_v13 = vsub.f32 1.0, %v184_v12  ;;  %v187_v14 = vmul.f32 %v184_v12, %v147_v10 }
  0xd3   :  { %v191_v15 = vmul.f32 %v189_v13, %v410_v30 }
  0xd5   :  { %v193_v16 = vadd.f32 %v191_v15, %v187_v14 }
  0xd7   :  { %195 = vst [vmem:[#allocation8 + $0x8] sm:$0xff] %v193_v16 }
  0xd8   :  { %208 = dma.vmem_to_hbm [thread:$0]  %s201_s29, 256, %s203_s5, [#allocation4], %s372_s24, %s372_s24, %s373_s25  }
  0xd9   :  { %366 = dma.done.wait [#allocation4], 256  }
  0xda   :  { %367 = vsyncadd [#allocation4], 4294967040 }
  0xdb   :  { %213 = vsyncpa [#allocation3], 1 }
  0xdc   :  { %214 = vsyncpa [#allocation6], 1 }
  0xdd   :  { %215 = vsyncpa [#allocation4], 1 }

</bundles_post_ra>
